<compile_context>
chip_gen: v5e
topology: v5e:2x2
jax: 0.10.0
libtpu: 0.0.40
codegen_flags: <defaults>
</compile_context>

<pallas_src>
import functools

import jax
import jax.numpy as jnp
from jax.experimental import pallas as pl
from jax.experimental.pallas import tpu as pltpu


def _detect_kernel(stride, nx, no, x_ref, w_ref, c_ref, o_ref):
    """One (batch, spatial-tile) block: fused 1x1 conv + sigmoid + box decode.

    x_ref: (C, T)  bf16  feature rows (spatial on lanes)
    w_ref: (N, C)  bf16  conv weight, N = na * no
    c_ref: (N, 2)  f32   col 0 = bias, col 1 = anchor_grid value (w/h rows only)
    o_ref: (N, T)  f32   decoded predictions, lane-dense
    """
    n_rows, t = o_ref.shape

    # 1x1 conv == matmul on the MXU; f32 accumulation.
    acc = jnp.dot(w_ref[...], x_ref[...], preferred_element_type=jnp.float32)
    acc = acc + c_ref[:, 0:1]                                   # bias

    # Sigmoid via tanh: transcendental stays on the EUP slot (no VPU divide).
    s = 0.5 * jnp.tanh(0.5 * acc) + 0.5

    # Which of the `no` outputs each sublane row is: o = row % no.
    # Float floor math (exact for these small integers); the +0.5 guards the
    # floor against any division rounding.
    r = jax.lax.broadcasted_iota(jnp.int32, (n_rows, t), 0).astype(jnp.float32)
    a = jnp.floor((r + 0.5) / float(no))
    o = r - a * float(no)

    # Spatial position of each lane -> grid x / y, computed in-kernel (no DMA).
    base = (pl.program_id(1) * t).astype(jnp.float32)
    col = base + jax.lax.broadcasted_iota(jnp.int32, (n_rows, t), 1).astype(jnp.float32)
    gy = jnp.floor((col + 0.5) / float(nx))
    gx = col - gy * float(nx)

    gridv = jnp.where(o == 0.0, gx, jnp.where(o == 1.0, gy, 0.0))
    xy = (s * 2.0 - 0.5 + gridv) * stride                       # x / y rows
    wh = (s * 2.0) ** 2 * c_ref[:, 1:2]                         # w / h rows
    o_ref[...] = jnp.where(o < 2.0, xy, jnp.where(o < 4.0, wh, s))


def _pick_tile(hw):
    # Lane tile for the spatial axis: as large as possible, multiple of 128
    # when tiling, else the full extent (allowed for the last block dim).
    for t in (1024, 512, 256, 128):
        if hw >= t and hw % t == 0:
            return t
    return hw


def detect_layer(x_nchw, weight, bias, anchors_i, stride_i, nc):
    bs, C, ny, nx = x_nchw.shape
    no = nc + 5
    na = anchors_i.shape[0]
    N = na * no
    hw = ny * nx

    # NCHW is already channels-major / spatial-minor: flatten spatial, no transpose.
    x_rows = x_nchw.reshape(bs, C, hw).astype(jnp.bfloat16)
    w_mat = weight.reshape(N, C).astype(jnp.bfloat16)

    # Per-output-row constants packed into one tiny (N, 2) tile:
    #   col 0: conv bias, col 1: anchor_grid value (nonzero only for o in {2, 3}).
    o_idx = jnp.arange(N) % no
    a_idx = jnp.arange(N) // no
    anc_wh = anchors_i.astype(jnp.float32) * float(stride_i)
    anc = jnp.where(o_idx == 2, anc_wh[a_idx, 0],
                    jnp.where(o_idx == 3, anc_wh[a_idx, 1], 0.0))
    consts = jnp.stack([bias.astype(jnp.float32), anc.astype(jnp.float32)], axis=1)

    t = _pick_tile(hw)
    grid = (bs, hw // t)

    kernel = functools.partial(_detect_kernel, float(stride_i), int(nx), int(no))
    out = pl.pallas_call(
        kernel,
        out_shape=jax.ShapeDtypeStruct((bs, N, hw), jnp.float32),
        grid_spec=pltpu.PrefetchScalarGridSpec(
            num_scalar_prefetch=0,
            grid=grid,
            in_specs=[
                pl.BlockSpec((None, C, t), lambda b, j: (b, 0, j)),   # activations
                pl.BlockSpec((N, C), lambda b, j: (0, 0)),            # conv weight
                pl.BlockSpec((N, 2), lambda b, j: (0, 0)),            # bias / anchor
            ],
            out_specs=pl.BlockSpec((None, N, t), lambda b, j: (b, 0, j)),
        ),
        compiler_params=pltpu.CompilerParams(
            dimension_semantics=("parallel", "parallel"),
            vmem_limit_bytes=32 * 1024 * 1024,
        ),
    )(x_rows, w_mat, consts)

    # (bs, na*no, ny*nx) -> (bs, na, ny, nx, no) -> (bs, na*ny*nx, no), matching torch.
    y = out.reshape(bs, na, no, ny, nx)
    y = jnp.transpose(y, (0, 1, 3, 4, 2))
    return y.reshape(bs, na * ny * nx, no)


def detect_forward(xs, weights, biases, anchors, strides, nc):
    zs = [detect_layer(xs[i], weights[i], biases[i], anchors[i], strides[i], nc)
          for i in range(len(xs))]
    return jnp.concatenate(zs, axis=1)


def detect_reference(xs, weights, biases, anchors, strides, nc):
    """Pure-JAX reference mirroring the torch forward pass (conv operands cast to
    bf16 to match the kernel's MXU numerics; decode in f32)."""
    no = nc + 5
    zs = []
    for i, x in enumerate(xs):
        bs, C, ny, nx = x.shape
        na = anchors[i].shape[0]
        w = weights[i].reshape(na * no, C).astype(jnp.bfloat16)
        y = jnp.einsum("oc,bchw->bohw", w, x.astype(jnp.bfloat16),
                       preferred_element_type=jnp.float32)
        y = y + biases[i][None, :, None, None]
        y = y.reshape(bs, na, no, ny, nx).transpose(0, 1, 3, 4, 2)
        yv, xv = jnp.meshgrid(jnp.arange(ny), jnp.arange(nx), indexing="ij")
        grid = jnp.stack([xv, yv], axis=-1).astype(jnp.float32)[None, None]
        agrid = (anchors[i] * strides[i]).reshape(1, na, 1, 1, 2)
        s = jax.nn.sigmoid(y)
        xy = (s[..., 0:2] * 2.0 - 0.5 + grid) * strides[i]
        wh = (s[..., 2:4] * 2.0) ** 2 * agrid
        out = jnp.concatenate([xy, wh, s[..., 4:]], axis=-1)
        zs.append(out.reshape(bs, -1, no))
    return jnp.concatenate(zs, axis=1)


if __name__ == "__main__":
    key = jax.random.PRNGKey(0)

    # small Detect config: nc=3 -> no=8, nl=2 levels, na=3 anchors per level
    nc = 3
    no = nc + 5
    anchors_cfg = ((10., 13., 16., 30., 33., 23.),
                   (30., 61., 62., 45., 59., 119.))
    anchors = jnp.asarray(anchors_cfg, dtype=jnp.float32).reshape(2, 3, 2)
    strides = (8.0, 16.0)
    ch = (8, 16)
    na = 3
    bs = 2
    spatial = (16, 8)

    # deterministic params (synthetic init, not a checkpoint load)
    keys = jax.random.split(key, 3 * len(ch))
    weights, biases, xs = [], [], []
    kidx = 0
    for li, c in enumerate(ch):
        weights.append(0.05 * jax.random.normal(keys[kidx], (na * no, c, 1, 1), jnp.float32)); kidx += 1
        biases.append(0.05 * jax.random.normal(keys[kidx], (na * no,), jnp.float32)); kidx += 1
        xs.append(jax.random.normal(keys[kidx], (bs, c, spatial[li], spatial[li]), jnp.float32)); kidx += 1

    out = jax.block_until_ready(detect_forward(xs, weights, biases, anchors, strides, nc))
    ref = detect_reference(xs, weights, biases, anchors, strides, nc)

    total = na * sum(s * s for s in spatial)
    assert out.shape == (bs, total, no), out.shape
    max_err = float(jnp.max(jnp.abs(out - ref)))
    assert jnp.allclose(out, ref, rtol=1e-3, atol=1e-3), max_err

    print("KERNEL_OK")
</pallas_src>

<mosaic_0001>
module attributes {stable_mosaic.version = 11 : i64} {
  func.func @_detect_kernel(%arg0: i32, %arg1: i32, %arg2: memref<1x8x256xbf16, #tpu.memory_space<vmem>>, %arg3: memref<24x8xbf16, #tpu.memory_space<vmem>>, %arg4: memref<24x2xf32, #tpu.memory_space<vmem>>, %arg5: memref<1x24x256xf32, #tpu.memory_space<vmem>>) attributes {dimension_semantics = [#tpu.dimension_semantics<parallel>, #tpu.dimension_semantics<parallel>], iteration_bounds = array<i64: 2, 1>, scalar_prefetch = 0 : i64, scratch_operands = 0 : i64, tpu.core_type = #tpu.core_type<tc>, window_params = [{transform_indices = @transform_0, window_bounds = array<i64: 1, 8, 256>}, {pipeline_mode = #tpu.pipeline_mode<synchronous>, transform_indices = @transform_1, window_bounds = array<i64: 24, 8>}, {pipeline_mode = #tpu.pipeline_mode<synchronous>, transform_indices = @transform_2, window_bounds = array<i64: 24, 2>}, {transform_indices = @transform_3, window_bounds = array<i64: 1, 24, 256>}]} {
    %c0 = arith.constant 0 : index
    %c0_0 = arith.constant 0 : index
    %0 = vector.load %arg3[%c0, %c0_0] : memref<24x8xbf16, #tpu.memory_space<vmem>>, vector<24x8xbf16>
    %c0_1 = arith.constant 0 : index
    %c0_2 = arith.constant 0 : index
    %c0_3 = arith.constant 0 : index
    %1 = vector.load %arg2[%c0_1, %c0_2, %c0_3] : memref<1x8x256xbf16, #tpu.memory_space<vmem>>, vector<1x8x256xbf16>
    %2 = vector.shape_cast %1 : vector<1x8x256xbf16> to vector<8x256xbf16>
    %cst = arith.constant dense<0.000000e+00> : vector<24x256xf32>
    %3 = tpu.matmul %0, %2, %cst {dimension_numbers = #tpu.dot_dimension_numbers<[1], [0], [0], [1], [0, 0, 1, 1], [], []>} : vector<24x8xbf16>, vector<8x256xbf16>, vector<24x256xf32> -> vector<24x256xf32>
    %c0_4 = arith.constant 0 : index
    %c0_5 = arith.constant 0 : index
    %4 = vector.load %arg4[%c0_4, %c0_5] : memref<24x2xf32, #tpu.memory_space<vmem>>, vector<24x1xf32>
    %5 = vector.broadcast %4 : vector<24x1xf32> to vector<24x256xf32>
    %6 = arith.addf %3, %5 : vector<24x256xf32>
    %cst_6 = arith.constant 5.000000e-01 : f32
    %7 = vector.broadcast %cst_6 : f32 to vector<24x256xf32>
    %8 = arith.mulf %7, %6 : vector<24x256xf32>
    %9 = math.tanh %8 : vector<24x256xf32>
    %cst_7 = arith.constant 5.000000e-01 : f32
    %10 = vector.broadcast %cst_7 : f32 to vector<24x256xf32>
    %11 = arith.mulf %10, %9 : vector<24x256xf32>
    %cst_8 = arith.constant 5.000000e-01 : f32
    %12 = vector.broadcast %cst_8 : f32 to vector<24x256xf32>
    %13 = arith.addf %11, %12 : vector<24x256xf32>
    %14 = tpu.iota {dimensions = array<i32: 0>} : vector<24x256xi32>
    %15 = arith.sitofp %14 : vector<24x256xi32> to vector<24x256xf32>
    %cst_9 = arith.constant 5.000000e-01 : f32
    %16 = vector.broadcast %cst_9 : f32 to vector<24x256xf32>
    %17 = arith.addf %15, %16 : vector<24x256xf32>
    %cst_10 = arith.constant 8.000000e+00 : f32
    %18 = vector.broadcast %cst_10 : f32 to vector<24x256xf32>
    %19 = arith.divf %17, %18 : vector<24x256xf32>
    %20 = math.floor %19 : vector<24x256xf32>
    %cst_11 = arith.constant 8.000000e+00 : f32
    %21 = vector.broadcast %cst_11 : f32 to vector<24x256xf32>
    %22 = arith.mulf %20, %21 : vector<24x256xf32>
    %23 = arith.subf %15, %22 : vector<24x256xf32>
    %c256_i32 = arith.constant 256 : i32
    %24 = arith.muli %arg1, %c256_i32 : i32
    %25 = arith.sitofp %24 : i32 to f32
    %26 = tpu.iota {dimensions = array<i32: 1>} : vector<24x256xi32>
    %27 = arith.sitofp %26 : vector<24x256xi32> to vector<24x256xf32>
    %28 = vector.broadcast %25 : f32 to vector<24x256xf32>
    %29 = arith.addf %28, %27 : vector<24x256xf32>
    %cst_12 = arith.constant 5.000000e-01 : f32
    %30 = vector.broadcast %cst_12 : f32 to vector<24x256xf32>
    %31 = arith.addf %29, %30 : vector<24x256xf32>
    %cst_13 = arith.constant 1.600000e+01 : f32
    %32 = vector.broadcast %cst_13 : f32 to vector<24x256xf32>
    %33 = arith.divf %31, %32 : vector<24x256xf32>
    %34 = math.floor %33 : vector<24x256xf32>
    %cst_14 = arith.constant 1.600000e+01 : f32
    %35 = vector.broadcast %cst_14 : f32 to vector<24x256xf32>
    %36 = arith.mulf %34, %35 : vector<24x256xf32>
    %37 = arith.subf %29, %36 : vector<24x256xf32>
    %cst_15 = arith.constant 0.000000e+00 : f32
    %38 = vector.broadcast %cst_15 : f32 to vector<24x256xf32>
    %39 = arith.cmpf oeq, %23, %38 : vector<24x256xf32>
    %cst_16 = arith.constant 1.000000e+00 : f32
    %40 = vector.broadcast %cst_16 : f32 to vector<24x256xf32>
    %41 = arith.cmpf oeq, %23, %40 : vector<24x256xf32>
    %cst_17 = arith.constant 0.000000e+00 : f32
    %42 = vector.broadcast %cst_17 : f32 to vector<24x256xf32>
    %43 = arith.select %41, %34, %42 : vector<24x256xi1>, vector<24x256xf32>
    %44 = arith.select %39, %37, %43 : vector<24x256xi1>, vector<24x256xf32>
    %cst_18 = arith.constant 2.000000e+00 : f32
    %45 = vector.broadcast %cst_18 : f32 to vector<24x256xf32>
    %46 = arith.mulf %13, %45 : vector<24x256xf32>
    %cst_19 = arith.constant 5.000000e-01 : f32
    %47 = vector.broadcast %cst_19 : f32 to vector<24x256xf32>
    %48 = arith.subf %46, %47 : vector<24x256xf32>
    %49 = arith.addf %48, %44 : vector<24x256xf32>
    %cst_20 = arith.constant 8.000000e+00 : f32
    %50 = vector.broadcast %cst_20 : f32 to vector<24x256xf32>
    %51 = arith.mulf %49, %50 : vector<24x256xf32>
    %cst_21 = arith.constant 2.000000e+00 : f32
    %52 = vector.broadcast %cst_21 : f32 to vector<24x256xf32>
    %53 = arith.mulf %13, %52 : vector<24x256xf32>
    %54 = arith.mulf %53, %53 : vector<24x256xf32>
    %c0_22 = arith.constant 0 : index
    %c1 = arith.constant 1 : index
    %55 = vector.load %arg4[%c0_22, %c1] : memref<24x2xf32, #tpu.memory_space<vmem>>, vector<24x1xf32>
    %56 = vector.broadcast %55 : vector<24x1xf32> to vector<24x256xf32>
    %57 = arith.mulf %54, %56 : vector<24x256xf32>
    %cst_23 = arith.constant 2.000000e+00 : f32
    %58 = vector.broadcast %cst_23 : f32 to vector<24x256xf32>
    %59 = arith.cmpf olt, %23, %58 : vector<24x256xf32>
    %cst_24 = arith.constant 4.000000e+00 : f32
    %60 = vector.broadcast %cst_24 : f32 to vector<24x256xf32>
    %61 = arith.cmpf olt, %23, %60 : vector<24x256xf32>
    %62 = arith.select %61, %57, %13 : vector<24x256xi1>, vector<24x256xf32>
    %63 = arith.select %59, %51, %62 : vector<24x256xi1>, vector<24x256xf32>
    %c0_25 = arith.constant 0 : index
    %c0_26 = arith.constant 0 : index
    %c0_27 = arith.constant 0 : index
    %64 = vector.load %arg5[%c0_25, %c0_26, %c0_27] : memref<1x24x256xf32, #tpu.memory_space<vmem>>, vector<1x24x256xf32>
    %65 = vector.shape_cast %64 : vector<1x24x256xf32> to vector<24x256xf32>
    %66 = vector.shape_cast %63 : vector<24x256xf32> to vector<1x24x256xf32>
    tpu.vector_store %arg5[%c0_25, %c0_26, %c0_27], %66 {strides = array<i32>} : memref<1x24x256xf32, #tpu.memory_space<vmem>>, vector<1x24x256xf32>,
    return
  }
  func.func @transform_0(%arg0: i32, %arg1: i32) -> (i32, i32, i32) {
    %c0_i32 = arith.constant 0 : i32
    %c0_i32_0 = arith.constant 0 : i32
    return %arg0, %c0_i32, %arg1 : i32, i32, i32
  }
  func.func @transform_1(%arg0: i32, %arg1: i32) -> (i32, i32) {
    %c0_i32 = arith.constant 0 : i32
    %c0_i32_0 = arith.constant 0 : i32
    %c0_i32_1 = arith.constant 0 : i32
    return %c0_i32, %c0_i32_0 : i32, i32
  }
  func.func @transform_2(%arg0: i32, %arg1: i32) -> (i32, i32) {
    %c0_i32 = arith.constant 0 : i32
    %c0_i32_0 = arith.constant 0 : i32
    %c0_i32_1 = arith.constant 0 : i32
    return %c0_i32, %c0_i32_0 : i32, i32
  }
  func.func @transform_3(%arg0: i32, %arg1: i32) -> (i32, i32, i32) {
    %c0_i32 = arith.constant 0 : i32
    %c0_i32_0 = arith.constant 0 : i32
    return %arg0, %c0_i32, %arg1 : i32, i32, i32
  }
}

</mosaic_0001>

<bundles_post_ra>
// kernel: tpu_custom_call.1
= control target key start
LH: loop header
LB: loop body
LE: loop exit
PB: predicated region body
PF: predicated region fallthrough
CT: control target
= control target key end

     0   :  { %8 = vsyncpa [#allocation3], 0  ;;  %s964_s0 = inlined_call_operand.vmem [shape: bf16[2,8,256], index: 0, kind: input, shape index: {}]   ;;  %s965_s1 = inlined_call_operand.vmem [shape: bf16[24,8], index: 1, kind: input, shape index: {}]   ;;  %s966_s2 = inlined_call_operand.vmem [shape: f32[24,2], index: 2, kind: input, shape index: {}]   ;;  %s967_s3 = inlined_call_operand.hbm [shape: f32[2,24,256], index: 3, kind: output, shape index: {}]  }
   0x1   :  { %10 = vsyncpa [#allocation3 + $0x1], 0  ;;  %s771_s12 = smov 0   ;;  %s773_s13 = smov 0  }
   0x2   :  { %s775_s14 = smov 0   ;;  %s777_s15 = smov 0  }
   0x3   :  { %s779_s16 = smov 0   ;;  %s781_s17 = smov 0  }
   0x4 LB: > { %s553_s18 = sadd.s32 4294967295, %s743_s17   ;;  %s554_s19 = sadd.s32 4294967294, %s743_s17   ;;  %s743_s17 = sphi %s781_s17, %s16_s17   ;;  %s739_s16 = sphi %s779_s16, %s974_s16   ;;  %s735_s15 = sphi %s777_s15, %s973_s15   ;;  %s731_s14 = sphi %s775_s14, %s972_s14   ;;  %s727_s13 = sphi %s773_s13, %s971_s13   ;;  %s723_s12 = sphi %s771_s12, %s970_s12  }
   0x5   : > { %s28_s20 = sadd.s32 1, %s739_s16  ;;  %s107_s21 = sadd.s32 1, %s731_s14 }
   0x6   : > { %p30_p0 = scmp.ge.s32.totalorder %s28_s20, 2  ;;  %p117_p1 = scmp.ne.s32.totalorder %s731_s14, %s727_s13 }
   0x7   : > { %p118_p2 = scmp.eq.s32.totalorder %s553_s18, 1  ;;  %p123_p3 = scmp.ne.s32.totalorder %s727_s13, %s723_s12 }
   0x8   : > { %s976_s20 = smov (%p30_p0, %s28_s20), 0  ;;  %p124_p5 = scmp.eq.s32.totalorder %s554_s19, 1 }
   0x9   : > { %p811_p4 = por %p118_p2, %p117_p1  ;;  %s102_s23 = ssub.s32 %s739_s16, %s976_s20 }
   0xa   : > { %p557_p6 = scmp.ge.s32.totalorder %s743_s17, 1  ;;  %p105_p7 = scmp.eq.s32.totalorder %s102_s23, 0 }
   0xb   : > { %p818_p8 = por %p124_p5, %p123_p3  ;;  %p161_p9 = scmp.lt.s32.totalorder %s743_s17, 3 }
   0xc   : > { %s824_s25 = scalar_select %p105_p7, %s731_s14, %s107_s21  }
   0xd   : > { %p162_p10 = pnand %p557_p6, %p161_p9 }
   0xe   : > { %p190_p11 = scmp.lt.s32.totalorder (!%p162_p10), %s735_s15, 1  ;;  %s186_s21 = sand.u32 (!%p162_p10), 1, %s727_s13  }
   0xf   : > { %165 = sbr.rel (%p162_p10) target bundleno = 197 (0xc5), region = 32  ;;  %s457_s5 = scalar_lea.sflag (!%p162_p10), [#allocation3], %s186_s21 }
  0x10   : > { %s883_s23 = smul.u32 (!%p162_p10), 48, %s186_s21  ;;  %s685_s10 = scalar_lea.hbm (!%p162_p10), %s967_s3, 96 }
  0x11   : > { %s582_s26 = smul.u32 (!%p162_p10), 48, %s735_s15 }
  0x13   : > { %s470_s29 = scalar_lea.hbm (!%p162_p10), %s967_s3, %s582_s26 }
  0x14   : > { %v205_v0 = vld [vmem:[%s966_s2] sm:$0xff]  ;;  %v207_v1 = vld [vmem:[%s966_s2 + $0x10] sm:$0xff]  ;;  %s191_s30 = scalar_select %p190_p11, %s735_s15, 1  ;;  %v745_v2 = vmov 0   ;;  %v203_v3 = vld [vmem:[%s965_s1 + $0x8] sm:$0xf]  ;;  %v310_v21 = vlaneseq }
  0x15   : > { %644 = vset.pattern.permute.xlu0 %v745_v2  ;;  %645 = vset.pattern.permute.xlu1 %v745_v2  ;;  %v206_v4 = vld [vmem:[%s966_s2 + $0x8] sm:$0xff]  ;;  %v746_v5 = vmov 1   ;;  %v228_v9 = vunpack.c.l.b16 %v203_v3  ;;  %vm243_vm0 = vcmask 1043456   ;;  %v578_v14 = vld [vmem:[%s965_s1] sm:$0xff]  ;;  %vm236_vm1 = vcmask 64512   ;;  %s899_s15 = scalar_lea.vmem [#allocation2], %s883_s23 }
  0x16   : > { %210 = vperm.xlu0 %644, %v205_v0   ;;  %220 = vperm.xlu1 %645, %v207_v1   ;;  %s577_s4 = sshll.u32 %s191_s30, 3  ;;  %v747_v16 = vmov 8.0   ;;  %v748_v18 = vmov 16.0   ;;  %v311_v24 = vshrl.u32 %v310_v21, 7  ;;  %v342_v26 = vand.u32 127, %v310_v21  ;;  %s471_s30 = sshll.u32 %s899_s15, 4  ;;  %s472_s30 = int_to_ptr.vmem [resolvable:$true] %s471_s30 }
  0x17   : > { %647 = vset.pattern.permute.xlu2 %v746_v5  ;;  %s197_s11 = scalar_lea.vmem %s964_s0, %s577_s4  ;;  %v230_v15 = vpack.c.b16 %v228_v9, %v228_v9  ;;  %649 = vrcp.f32 %v747_v16  ;;  %s473_s4 = sshll.u32 %s470_s29, 4  ;;  %s474_s4 = int_to_ptr.hbm [resolvable:$true] %s473_s4 }
  0x18   : > { %419 = vperm.xlu2 %647, %v206_v4   ;;  %v204_v6 = vld [vmem:[%s197_s11] sm:$0xff]  ;;  %651 = vrcp.f32 %v748_v18  ;;  %v312_v28 = vadd.s32 8, %v311_v24  ;;  %v314_v29 = vcvt.s32.f32 %v311_v24  ;;  %v313_v31 = vadd.s32 16, %v311_v24  ;;  %s679_s6 = sshra.s32 %s474_s4, 4  ;;  %s680_s6 = int_to_ptr.hbm [resolvable:$true] %s679_s6 }
  0x19   : > { %v232_v7 = vunpack.c.l.b16 %v204_v6  ;;  %v233_v8 = vunpack.c.h.b16 %v204_v6  ;;  %v343_v32 = vadd.s32 128, %v342_v26  ;;  %v344_v38 = vcvt.s32.f32 %v342_v26  ;;  %s681_s7 = scalar_lea.hbm %s680_s6, 48  ;;  %p686_p1 = scmp.lt.s32.totalorder %s680_s6, %s967_s3 }
  0x1a   : > { %v315_v34 = vcvt.s32.f32 %v312_v28  ;;  %v317_v35 = vadd.f32 0.5, %v314_v29  ;;  %v316_v37 = vcvt.s32.f32 %v313_v31  ;;  %p682_p12 = scmp.ne.s32.totalorder %s680_s6, %s681_s7  ;;  %p687_p2 = scmp.lt.s32.totalorder %s685_s10, %s681_s7 }
  0x1b   : > { %v234_v10 = vpack.c.b16 %v232_v7, %v232_v7  ;;  %v235_v11 = vpack.c.b16 %v233_v8, %v233_v8  ;;  %v345_v39 = vcvt.s32.f32 %v343_v32  ;;  %v349_v44 = vadd.f32 0.5, %v344_v38 }
  0x1c   : > { %v318_v41 = vadd.f32 0.5, %v315_v34  ;;  %v319_v43 = vadd.f32 0.5, %v316_v37  ;;  %p683_p13 = pnand %p682_p12, %p811_p4  ;;  %p688_p3 = por %p687_p2, %p686_p1 }
  0x1d   : > { %v245_v12 = vsel %vm243_vm0, %v234_v10, 0  ;;  %v248_v13 = vsel %vm243_vm0, %v235_v11, 0  ;;  %v650_v17 = vpop.eup %649  ;;  %v350_v45 = vadd.f32 0.5, %v345_v39 }
  0x1e   : > { %215 = vperm.xlu0 %644, %v206_v4   ;;  %646 = vset.pattern.permute.xlu1 %v746_v5  ;;  %v321_v19 = vmul.f32 8.0, %v650_v17  ;;  %v652_v20 = vpop.eup %651  ;;  %vm325_vm2 = vweird.f32 %v650_v17  ;;  %p684_p0 = pneg %p683_p13 }
  0x1f   : > { %257 = vmatpush.bf16.msra.mxu0 %v245_v12  ;;  %579 = vmatpush.bf16.msra.mxu2 %v245_v12  ;;  %v352_v23 = vmul.f32 16.0, %v652_v20  ;;  %vm356_vm3 = vweird.f32 %v652_v20 }
  0x20   : > { %275 = vmatpush.bf16.msra.mxu1 %v248_v13  ;;  %580 = vmatpush.bf16.msra.mxu3 %v248_v13  ;;  %v322_v22 = vsub.f32 1.0, %v321_v19  ;;  %p689_p5 = pnand %p688_p3, %p684_p0 }
  0x21   : > { %415 = vperm.xlu1 %646, %v205_v0   ;;  %423 = vperm.xlu2 %647, %v207_v1   ;;  %v353_v27 = vsub.f32 1.0, %v352_v23 }
  0x22   : > { %564 = vmatmul.msk.bf16.vlgmr.msra.gmra.mxu0 %vm236_vm1, %v578_v14  ;;  %565 = vmatmul.msk.bf16.vlgmr.msra.gmra.mxu2 %vm236_vm1, %v230_v15  ;;  %v323_v25 = vmul.f32 %v650_v17, %v322_v22 }
  0x23   : > { %566 = vmatmul.msk.bf16.vlgmr.msra.gmra.mxu1 %vm236_vm1, %v578_v14  ;;  %567 = vmatmul.msk.bf16.vlgmr.msra.gmra.mxu3 %vm236_vm1, %v230_v15  ;;  %v354_v33 = vmul.f32 %v652_v20, %v353_v27 }
  0x24   : > { %v324_v30 = vadd.f32 %v650_v17, %v323_v25 }
  0x25   : > { %v355_v40 = vadd.f32 %v652_v20, %v354_v33 }
  0x26   : > { %648 = vset.pattern.permute.xlu0 %v746_v5  ;;  %v326_v36 = vsel %vm325_vm2, %v650_v17, %v324_v30 }
  0x27   : > { %v327_v42 = vmul.f32 %v326_v36, %v317_v35  ;;  %v357_v46 = vsel %vm356_vm3, %v652_v20, %v355_v40  ;;  %v328_v47 = vmul.f32 %v326_v36, %v318_v41  ;;  %v329_v49 = vmul.f32 %v326_v36, %v319_v43 }
  0x28   : > { %v358_v50 = vmul.f32 %v357_v46, %v349_v44  ;;  %v359_v51 = vmul.f32 %v357_v46, %v350_v45 }
  0x29   : > { %v330_v48 = vfloor.f32 %v327_v42  ;;  %v331_v53 = vfloor.f32 %v328_v47  ;;  %v332_v55 = vfloor.f32 %v329_v49 }
  0x2a   : > { %v360_v57 = vfloor.f32 %v358_v50  ;;  %v361_v58 = vfloor.f32 %v359_v51 }
  0x2b   : > { %v333_v54 = vmul.f32 8.0, %v330_v48  ;;  %v334_v62 = vmul.f32 8.0, %v331_v53  ;;  %v335_v1 = vmul.f32 8.0, %v332_v55 }
  0x2c   : > { %v362_v4 = vmul.f32 16.0, %v360_v57  ;;  %v363_v5 = vmul.f32 16.0, %v361_v58 }
  0x2d   : > { %v846_v63 = vsub.f32 %v314_v29, %v333_v54  ;;  %v848_v7 = vsub.f32 %v315_v34, %v334_v62  ;;  %v851_v10 = vsub.f32 %v316_v37, %v335_v1 }
  0x2e   : > { %v364_v14 = vsub.f32 %v344_v38, %v362_v4  ;;  %v365_v15 = vsub.f32 %v345_v39, %v363_v5 }
  0x2f   : > { %vm369_vm4 = vcmp.eq.f32.partialorder %v846_v63, 1.0  ;;  %vm366_vm5 = vcmp.eq.f32.partialorder %v846_v63, 0.0  ;;  %vm370_vm6 = vcmp.eq.f32.partialorder %v848_v7, 1.0  ;;  %vm368_vm7 = vcmp.eq.f32.partialorder %v851_v10, 0.0 }
  0x30   : > { %v372_v19 = vsel %vm369_vm4, %v360_v57, 0.0  ;;  %v373_v22 = vsel %vm369_vm4, %v361_v58, 0.0  ;;  %vm371_vm8 = vcmp.eq.f32.partialorder %v851_v10, 1.0  ;;  %vm367_vm9 = vcmp.eq.f32.partialorder %v848_v7, 0.0 }
  0x31   : > { %v374_v29 = vsel %vm370_vm6, %v360_v57, 0.0  ;;  %v375_v30 = vsel %vm370_vm6, %v361_v58, 0.0  ;;  %v376_v33 = vsel %vm371_vm8, %v360_v57, 0.0  ;;  %v377_v34 = vsel %vm371_vm8, %v361_v58, 0.0 }
  0x32   : > { %v378_v38 = vsel %vm366_vm5, %v364_v14, %v372_v19  ;;  %v379_v39 = vsel %vm366_vm5, %v365_v15, %v373_v22  ;;  %v380_v40 = vsel %vm367_vm9, %v364_v14, %v374_v29  ;;  %vm432_vm10 = vcmp.lt.f32.partialorder %v846_v63, 2.0 }
  0x33   : > { %vm435_vm11 = vcmp.lt.f32.partialorder %v846_v63, 4.0  ;;  %v875_v43 = vsel %vm367_vm9, %v365_v15, %v375_v30  ;;  %v382_v46 = vsel %vm368_vm7, %v364_v14, %v376_v33  ;;  %v383_v47 = vsel %vm368_vm7, %v365_v15, %v377_v34 }
  0x34   : > { %vm437_vm12 = vcmp.lt.f32.partialorder %v851_v10, 4.0  ;;  %vm436_vm13 = vcmp.lt.f32.partialorder %v848_v7, 4.0  ;;  %vm434_vm14 = vcmp.lt.f32.partialorder %v851_v10, 2.0  ;;  %vm433_vm15 = vcmp.lt.f32.partialorder %v848_v7, 2.0 }
  0x72   : > { %v862_v36 = vpop.permute.xlu2 %419 }
  0x88   : > { %v211_v52 = vpop.permute.xlu0 %210  ;;  %v221_v3 = vpop.permute.xlu1 %220 }
  0x90   : > { %v216_v11 = vpop.permute.xlu0 %215 }
  0x93   : > { %v416_v44 = vpop.permute.xlu1 %415 }
  0x9f   : > { %v259_v56 = vpop.f32.mrf.mxu0 }
  0xa0   : > { %v260_v59 = vadd.f32 %v259_v56, %v211_v52  ;;  %v277_v60 = vpop.f32.mrf.mxu1 }
  0xa1   : > { %v278_v61 = vadd.f32 %v277_v60, %v211_v52 }
  0xa2   : > { %v286_v0 = vmul.f32 0.5, %v260_v59 }
  0xa3   : > { %v287_v2 = vmul.f32 0.5, %v278_v61 }
  0xa4   : > { %653 = vtanh.f32 %v286_v0 }
  0xa5   : > { %655 = vtanh.f32 %v287_v2  ;;  %v264_v6 = vpop.f32.mrf.mxu2 }
  0xa6   : > { %v265_v8 = vadd.f32 %v264_v6, %v221_v3  ;;  %v282_v9 = vpop.f32.mrf.mxu3 }
  0xa7   : > { %v283_v12 = vadd.f32 %v282_v9, %v221_v3  ;;  %v261_v13 = vpop.f32.mrf.mxu0 }
  0xa8   : > { %v290_v16 = vmul.f32 0.5, %v265_v8  ;;  %v262_v17 = vadd.f32 %v261_v13, %v216_v11  ;;  %v279_v18 = vpop.f32.mrf.mxu1 }
  0xa9   : > { %v291_v20 = vmul.f32 0.5, %v283_v12  ;;  %v280_v21 = vadd.f32 %v279_v18, %v216_v11  ;;  %v424_v18 = vpop.permute.xlu2 %423 }
  0xaa   : > { %v654_v23 = vpop.eup %653  ;;  %657 = vtanh.f32 %v290_v16  ;;  %v288_v24 = vmul.f32 0.5, %v262_v17 }
  0xab   : > { %v656_v25 = vpop.eup %655  ;;  %v298_v26 = vmul.f32 0.5, %v654_v23  ;;  %659 = vtanh.f32 %v291_v20  ;;  %v289_v27 = vmul.f32 0.5, %v280_v21 }
  0xac   : > { %v299_v28 = vmul.f32 0.5, %v656_v25  ;;  %661 = vtanh.f32 %v288_v24 }
  0xad   : > { %v304_v31 = vadd.f32 0.5, %v298_v26  ;;  %663 = vtanh.f32 %v289_v27  ;;  %v266_v32 = vpop.f32.mrf.mxu2 }
  0xae   : > { %v305_v35 = vadd.f32 0.5, %v299_v28  ;;  %v284_v37 = vpop.f32.mrf.mxu3 }
  0xaf   : > { %v384_v41 = vmul.f32 2.0, %v304_v31 }
  0xb0   : > { %v658_v42 = vpop.eup %657  ;;  %v385_v45 = vmul.f32 2.0, %v305_v35 }
  0xb1   : > { %v660_v48 = vpop.eup %659  ;;  %v302_v49 = vmul.f32 0.5, %v658_v42  ;;  %v568_v50 = vadd.f32 -0.5, %v384_v41  ;;  %v408_v51 = vmul.f32 %v384_v41, %v384_v41 }
  0xb2   : > { %v662_v52 = vpop.eup %661  ;;  %v303_v53 = vmul.f32 0.5, %v660_v48  ;;  %v569_v54 = vadd.f32 -0.5, %v385_v45  ;;  %v409_v55 = vmul.f32 %v385_v45, %v385_v45 }
  0xb3   : > { %v664_v56 = vpop.eup %663  ;;  %v308_v57 = vadd.f32 0.5, %v302_v49  ;;  %v300_v58 = vmul.f32 0.5, %v662_v52  ;;  %v396_v59 = vadd.f32 %v568_v50, %v378_v38  ;;  %v426_v60 = vmul.f32 %v416_v44, %v408_v51 }
  0xb4   : > { %v309_v61 = vadd.f32 0.5, %v303_v53  ;;  %v301_v62 = vmul.f32 0.5, %v664_v56  ;;  %v397_v0 = vadd.f32 %v569_v54, %v379_v39  ;;  %v427_v1 = vmul.f32 %v416_v44, %v409_v55 }
  0xb5   : > { %v306_v2 = vadd.f32 0.5, %v300_v58  ;;  %v402_v3 = vmul.f32 8.0, %v396_v59  ;;  %v438_v4 = vsel %vm435_vm11, %v426_v60, %v304_v31  ;;  %v388_v5 = vmul.f32 2.0, %v308_v57 }
  0xb6   : > { %v307_v6 = vadd.f32 0.5, %v301_v62  ;;  %v403_v8 = vmul.f32 8.0, %v397_v0  ;;  %v439_v9 = vsel %vm435_vm11, %v427_v1, %v305_v35  ;;  %v389_v11 = vmul.f32 2.0, %v309_v61 }
  0xb7   : > { %v386_v12 = vmul.f32 2.0, %v306_v2  ;;  %v444_v13 = vsel %vm432_vm10, %v402_v3, %v438_v4  ;;  %v572_v14 = vadd.f32 -0.5, %v388_v5  ;;  %v412_v15 = vmul.f32 %v388_v5, %v388_v5 }
  0xb8   : > { %v387_v16 = vmul.f32 2.0, %v307_v6  ;;  %v445_v17 = vsel %vm432_vm10, %v403_v8, %v439_v9  ;;  %450 = vst [vmem:[%s899_s15] sm:$0xff] %v444_v13  ;;  %v573_v19 = vadd.f32 -0.5, %v389_v11  ;;  %v413_v20 = vmul.f32 %v389_v11, %v389_v11 }
  0xb9   : > { %v570_v21 = vadd.f32 -0.5, %v386_v12  ;;  %v410_v22 = vmul.f32 %v386_v12, %v386_v12  ;;  %451 = vst [vmem:[%s899_s15 + $0x8] sm:$0xff] %v445_v17  ;;  %v400_v23 = vadd.f32 %v572_v14, %v382_v46  ;;  %v430_v24 = vmul.f32 %v424_v18, %v412_v15 }
  0xba   : > { %v571_v63 = vadd.f32 -0.5, %v387_v16  ;;  %v411_v25 = vmul.f32 %v387_v16, %v387_v16  ;;  %v401_v26 = vadd.f32 %v573_v19, %v383_v47  ;;  %v431_v27 = vmul.f32 %v424_v18, %v413_v20 }
  0xbb   : > { %v398_v28 = vadd.f32 %v570_v21, %v380_v40  ;;  %v428_v29 = vmul.f32 %v862_v36, %v410_v22  ;;  %v406_v30 = vmul.f32 8.0, %v400_v23  ;;  %v442_v31 = vsel %vm437_vm12, %v430_v24, %v308_v57 }
  0xbc   : > { %v399_v32 = vadd.f32 %v571_v63, %v875_v43  ;;  %v429_v33 = vmul.f32 %v862_v36, %v411_v25  ;;  %v407_v34 = vmul.f32 8.0, %v401_v26  ;;  %v443_v35 = vsel %vm437_vm12, %v431_v27, %v309_v61 }
  0xbd   : > { %v404_v37 = vmul.f32 8.0, %v398_v28  ;;  %v440_v38 = vsel %vm436_vm13, %v428_v29, %v306_v2  ;;  %v448_v39 = vsel %vm434_vm14, %v406_v30, %v442_v31 }
  0xbe   : > { %v405_v40 = vmul.f32 8.0, %v399_v32  ;;  %v441_v41 = vsel %vm436_vm13, %v429_v33, %v307_v6  ;;  %v449_v36 = vsel %vm434_vm14, %v407_v34, %v443_v35  ;;  %454 = vst [vmem:[%s899_s15 + $0x20] sm:$0xff] %v448_v39 }
  0xbf   : > { %v446_v42 = vsel %vm433_vm15, %v404_v37, %v440_v38  ;;  %455 = vst [vmem:[%s899_s15 + $0x28] sm:$0xff] %v449_v36 }
  0xc0   : > { %v447_v43 = vsel %vm433_vm15, %v405_v40, %v441_v41  ;;  %452 = vst [vmem:[%s899_s15 + $0x10] sm:$0xff] %v446_v42 }
  0xc1   : > { %453 = vst [vmem:[%s899_s15 + $0x18] sm:$0xff] %v447_v43 }
  0xc2   : > { %692 = shalt.err (!%p689_p5)
}
  0xc3   : > { %s749_s19 = smov 256   ;;  %s750_s21 = smov 16  }
  0xc4   : > { %583 = dma.vmem_to_hbm [thread:$0]  (%p811_p4), %s472_s30, 768, %s474_s4, %s457_s5, %s749_s19, %s749_s19, %s750_s21  }
  0xc5 PF: > { %p589_p6 = scmp.ge.s32.totalorder %s743_s17, 2  ;;  %s488_s23 = sand.u32 1, %s723_s12  }
  0xc6   : > { %s489_s26 = scalar_lea.sflag [#allocation3], %s488_s23 }
  0xc7   : > { %p586_p7 = pnand %p589_p6, %p818_p8 }
  0xc9   : > { %p587_p9 = pneg %p586_p7 }
  0xcb   : > { %718 = dma.done.wait (%p587_p9), %s489_s26, 768  }
  0xcc   : > { %720 = vsyncadd (%p587_p9), %s489_s26, 4294966528  ;;  %s16_s17 = sadd.s32 1, %s743_s17   ;;  %s970_s12 = smov %s727_s13 }
  0xcd   : > { %p13_p10 = scmp.ge.s32.totalorder %s16_s17, 4   ;;  %s971_s13 = smov %s731_s14 }
  0xce   : > { %s972_s14 = smov %s824_s25  ;;  %s973_s15 = smov %s739_s16 }
  0xcf   : > { %s974_s16 = smov %s976_s20  ;;  %15 = sbr.rel (!%p13_p10) target bundleno = 4 (0x4), region = 67 }
  0xd4   :  { %495 = vsyncpa [#allocation3], 1 }
  0xd5   :  { %497 = vsyncpa [#allocation3 + $0x1], 1 }

</bundles_post_ra>
